<compile_context>
chip_gen: v7x
topology: tpu7x:2x2x1
jax: 0.10.0
libtpu: 0.0.40
codegen_flags: <defaults>
</compile_context>

<pallas_src>
import functools

import jax
import jax.numpy as jnp
from jax import lax
from jax.experimental import pallas as pl
from jax.experimental.pallas import tpu as pltpu


# ---------------------------------------------------------------------------
# Generation-dependent VMEM budget + tiling helpers
# ---------------------------------------------------------------------------
def _vmem_limit_bytes():
    try:
        cap = int(pltpu.get_tpu_info().vmem_capacity_bytes)
        # ~48 MiB on 64-MiB parts (v7x), ~100 MiB on 128-MiB parts (v5e/v6e).
        return max(48 << 20, min(cap - (16 << 20), 100 << 20))
    except Exception:
        return 48 << 20


_VMEM_LIMIT = _vmem_limit_bytes()
_BIG_VMEM = _VMEM_LIMIT >= (96 << 20)   # v5e / v6e: room for bigger tiles


def _pick_tile(dim, target, align):
    """Largest tile <= target that is an `align`-multiple divisor of dim, else the full dim."""
    if dim <= target:
        return dim
    t = (target // align) * align
    while t >= align:
        if dim % t == 0:
            return t
        t -= align
    # TODO(synk): pad to a tileable size instead of falling back to the full
    # (possibly huge) dimension; the VMEM-fit checks below catch overflow.
    return dim


def _check_vmem(nbytes, what):
    if nbytes > _VMEM_LIMIT:
        raise ValueError(
            f"{what}: estimated VMEM working set {nbytes / 2**20:.1f} MiB exceeds the "
            f"{_VMEM_LIMIT / 2**20:.0f} MiB limit; use smaller tiles or pad the inputs.")


# ---------------------------------------------------------------------------
# Kernel 1: fused q/k/v projection (tiled matmul, shared bf16 x block,
# 3 f32 accumulators initialized with the biases, bf16 outputs)
# ---------------------------------------------------------------------------
def _qkv_proj_kernel(x_ref, wq_ref, wk_ref, wv_ref, bq_ref, bk_ref, bv_ref,
                     q_ref, k_ref, v_ref, qacc, kacc, vacc):
    @pl.when(pl.program_id(2) == 0)
    def _init():
        # Bias folded into the accumulator init (no separate finalize add).
        qacc[...] = jnp.broadcast_to(bq_ref[...], qacc.shape)
        kacc[...] = jnp.broadcast_to(bk_ref[...], kacc.shape)
        vacc[...] = jnp.broadcast_to(bv_ref[...], vacc.shape)

    x = x_ref[...]                                     # bf16 (tm, tk), read once
    qacc[...] += jnp.dot(x, wq_ref[...], preferred_element_type=jnp.float32)
    kacc[...] += jnp.dot(x, wk_ref[...], preferred_element_type=jnp.float32)
    vacc[...] += jnp.dot(x, wv_ref[...], preferred_element_type=jnp.float32)

    @pl.when(pl.program_id(2) == pl.num_programs(2) - 1)
    def _finalize():
        q_ref[...] = qacc[...].astype(q_ref.dtype)
        k_ref[...] = kacc[...].astype(k_ref.dtype)
        v_ref[...] = vacc[...].astype(v_ref.dtype)


def qkv_projection(x2d, wq_t, wk_t, wv_t, bq, bk, bv, *, tm=None, tn=None, tk=None):
    M, K = x2d.shape
    N = wq_t.shape[1]
    tm = _pick_tile(M, tm or 512, 8)                 # larger tm: weights re-streamed less
    tn = _pick_tile(N, tn or (512 if _BIG_VMEM else 256), 128)
    tk = _pick_tile(K, tk or 512, 128)
    grid = (M // tm, N // tn, K // tk)
    eb = jnp.dtype(x2d.dtype).itemsize               # bf16 -> 2 bytes

    _check_vmem(2 * tm * tk * eb                     # x (double-buffered)
                + 3 * 2 * tk * tn * eb               # wq/wk/wv blocks
                + 3 * tm * tn * 4                    # f32 accumulators
                + 3 * 2 * tm * tn * eb               # q/k/v output blocks
                + 3 * 2 * tn * 4,                    # biases
                "qkv_projection")

    gm, gn, _ = grid
    ce = pl.CostEstimate(
        flops=3 * 2 * M * N * K,
        transcendentals=0,
        bytes_accessed=(M * K * eb * gn              # x re-streamed per output column tile
                        + 3 * K * N * eb * gm        # weights re-streamed per output row tile
                        + 3 * N * 4 + 3 * M * N * eb),
    )

    x_spec = pl.BlockSpec((tm, tk), lambda i, j, k: (i, k))
    w_spec = pl.BlockSpec((tk, tn), lambda i, j, k: (k, j))
    b_spec = pl.BlockSpec((1, tn), lambda i, j, k: (0, j))
    o_spec = pl.BlockSpec((tm, tn), lambda i, j, k: (i, j))
    out_sds = jax.ShapeDtypeStruct((M, N), x2d.dtype)

    return pl.pallas_call(
        _qkv_proj_kernel,
        out_shape=(out_sds, out_sds, out_sds),
        grid=grid,
        in_specs=[x_spec, w_spec, w_spec, w_spec, b_spec, b_spec, b_spec],
        out_specs=(o_spec, o_spec, o_spec),
        scratch_shapes=[pltpu.VMEM((tm, tn), jnp.float32)] * 3,
        compiler_params=pltpu.CompilerParams(
            dimension_semantics=("parallel", "parallel", "arbitrary"),
            vmem_limit_bytes=_VMEM_LIMIT),
        cost_estimate=ce,
    )(x2d, wq_t, wk_t, wv_t, bq.reshape(1, N), bk.reshape(1, N), bv.reshape(1, N))


# ---------------------------------------------------------------------------
# Kernel 2: flash-style multi-head attention with fused output projection.
# Grid = (batch, q-tile, kv-tile); the kv axis is an "arbitrary" reduction with
# online softmax in VMEM scratch.  All heads of one (batch, q-tile) are handled
# per step, writing into a single lane-dense (tq, E) accumulator; the finalize
# normalizes post-PV and applies wo (resident) + bo before the single store.
# ---------------------------------------------------------------------------
def _mha_outproj_kernel(q_ref, k_ref, v_ref, wo_ref, bo_ref, o_ref,
                        acc, m_sc, l_sc, *, num_heads):
    j = pl.program_id(2)

    @pl.when(j == 0)
    def _init():
        acc[...] = jnp.zeros_like(acc)
        m_sc[...] = jnp.full_like(m_sc, -jnp.inf)
        l_sc[...] = jnp.zeros_like(l_sc)

    q = q_ref[0]                              # (tq,  E) bf16, scaling pre-folded
    k = k_ref[0]                              # (tkv, E) bf16
    v = v_ref[0]                              # (tkv, E) bf16
    dh = q.shape[-1] // num_heads

    # TODO(synk): for head_dim < 128, pack heads so QK^T / PV see >=128-wide
    # contracting/output dims (better MXU utilization on 256-wide MXUs).
    for h in range(num_heads):
        lo = h * dh
        qh = q[:, lo:lo + dh]
        kh = k[:, lo:lo + dh]
        vh = v[:, lo:lo + dh]
        # QK^T contracting the last dims — no in-kernel transpose of K.
        s = lax.dot_general(qh, kh, (((1,), (1,)), ((), ())),
                            preferred_element_type=jnp.float32)    # (tq, tkv)
        m_prev = m_sc[h]                                            # (tq, 1)
        m_new = jnp.maximum(m_prev, jnp.max(s, axis=-1, keepdims=True))
        alpha = jnp.exp(m_prev - m_new)                             # (tq, 1)
        e = jnp.exp(s - m_new)                                      # (tq, tkv)
        l_sc[h] = alpha * l_sc[h] + jnp.sum(e, axis=-1, keepdims=True)
        # Unnormalized PV matmul; normalization moved post-PV (finalize).
        pv = jnp.dot(e.astype(vh.dtype), vh, preferred_element_type=jnp.float32)
        acc[:, lo:lo + dh] = alpha * acc[:, lo:lo + dh] + pv
        m_sc[h] = m_new
    # TODO(synk): attention_mask / layer_head_mask / dropout / output_attentions
    # (module defaults None / None / 0.0 / False) are not implemented.

    @pl.when(j == pl.num_programs(2) - 1)
    def _finalize():
        # Exact post-PV normalization: a (tq, dh) multiply per head instead of
        # normalizing the (tq, S) probabilities.
        for h in range(num_heads):
            lo = h * dh
            acc[:, lo:lo + dh] = acc[:, lo:lo + dh] * (1.0 / l_sc[h])
        # Fused output projection: wo is grid-invariant (stays resident in VMEM).
        attn = acc[...].astype(wo_ref.dtype)                        # (tq, E) bf16
        out = jnp.dot(attn, wo_ref[...], preferred_element_type=jnp.float32)
        o_ref[0] = (out + bo_ref[...]).astype(o_ref.dtype)


def multi_head_attention_outproj(q, k, v, wo_t, bo, num_heads, *,
                                 out_dtype, tq=None, tkv=None):
    B, T, E = q.shape
    S = k.shape[1]
    H = num_heads
    tq = _pick_tile(T, tq or (512 if _BIG_VMEM else 256), 8)
    tkv = _pick_tile(S, tkv or 512, 8)
    grid = (B, T // tq, S // tkv)
    eb = jnp.dtype(q.dtype).itemsize                 # bf16 -> 2 bytes

    _check_vmem(2 * tq * E * eb                      # q block (double-buffered)
                + 2 * 2 * tkv * E * eb               # k, v blocks
                + E * E * eb + 2 * E * 4             # resident wo, bo
                + tq * E * 4                         # acc scratch
                + 2 * H * tq * 128 * 4               # m, l scratch (lane padded)
                + 2 * tq * E * 4,                    # output block
                "multi_head_attention_outproj")

    ce = pl.CostEstimate(
        flops=4 * B * T * S * E + 2 * B * T * E * E,
        transcendentals=B * H * T * S,
        bytes_accessed=(B * T * E * eb
                        + 2 * B * S * E * eb * (T // tq)
                        + E * E * eb + E * 4
                        + B * T * E * 4),
    )

    return pl.pallas_call(
        functools.partial(_mha_outproj_kernel, num_heads=num_heads),
        out_shape=jax.ShapeDtypeStruct((B, T, E), out_dtype),
        grid=grid,
        in_specs=[
            pl.BlockSpec((1, tq, E), lambda b, i, j: (b, i, 0)),
            pl.BlockSpec((1, tkv, E), lambda b, i, j: (b, j, 0)),
            pl.BlockSpec((1, tkv, E), lambda b, i, j: (b, j, 0)),
            pl.BlockSpec((E, E), lambda b, i, j: (0, 0)),        # wo: resident
            pl.BlockSpec((1, E), lambda b, i, j: (0, 0)),        # bo: resident
        ],
        out_specs=pl.BlockSpec((1, tq, E), lambda b, i, j: (b, i, 0)),
        scratch_shapes=[
            pltpu.VMEM((tq, E), jnp.float32),               # unnormalized PV accumulator
            pltpu.VMEM((num_heads, tq, 1), jnp.float32),    # running max per head
            pltpu.VMEM((num_heads, tq, 1), jnp.float32),    # running sum per head
        ],
        compiler_params=pltpu.CompilerParams(
            dimension_semantics=("parallel", "parallel", "arbitrary"),
            vmem_limit_bytes=_VMEM_LIMIT),
        cost_estimate=ce,
    )(q, k, v, wo_t, bo.reshape(1, E))


# ---------------------------------------------------------------------------
# Module forward (only reshapes / host-side dtype casts outside the kernels)
# ---------------------------------------------------------------------------
def sign_bart_attention(hidden_states, params, num_heads):
    B, T, E = hidden_states.shape
    assert E % num_heads == 0, "embed_dim must be divisible by num_heads"
    scaling = (E // num_heads) ** -0.5
    cdt = jnp.bfloat16

    # bf16 MXU path: cast activations / weights once on the host (halves DMA);
    # biases stay f32 and land on the f32 accumulators.
    x2d = hidden_states.reshape(B * T, E).astype(cdt)
    wq_t = (params["wq_t"] * scaling).astype(cdt)      # fold 1/sqrt(dh) into W_q
    bq = (params["bq"] * scaling).astype(jnp.float32)  # ... and into b_q
    wk_t = params["wk_t"].astype(cdt)
    wv_t = params["wv_t"].astype(cdt)
    wo_t = params["wo_t"].astype(cdt)

    q2d, k2d, v2d = qkv_projection(x2d, wq_t, wk_t, wv_t,
                                   bq, params["bk"], params["bv"])
    q = q2d.reshape(B, T, E)
    k = k2d.reshape(B, T, E)
    v = v2d.reshape(B, T, E)

    return multi_head_attention_outproj(q, k, v, wo_t, params["bo"], num_heads,
                                         out_dtype=hidden_states.dtype)


# ---------------------------------------------------------------------------
# Pure-JAX f32 reference for correctness check
# ---------------------------------------------------------------------------
def reference(hidden_states, params, num_heads):
    B, T, E = hidden_states.shape
    H = num_heads
    Dh = E // H
    scaling = Dh ** -0.5
    q = (hidden_states @ params["wq_t"] + params["bq"]) * scaling
    k = hidden_states @ params["wk_t"] + params["bk"]
    v = hidden_states @ params["wv_t"] + params["bv"]
    qh = q.reshape(B, T, H, Dh).transpose(0, 2, 1, 3)
    kh = k.reshape(B, T, H, Dh).transpose(0, 2, 1, 3)
    vh = v.reshape(B, T, H, Dh).transpose(0, 2, 1, 3)
    s = jnp.einsum("bhtd,bhsd->bhts", qh, kh)
    p = jax.nn.softmax(s, axis=-1)
    o = jnp.einsum("bhts,bhsd->bhtd", p, vh)
    o = o.transpose(0, 2, 1, 3).reshape(B, T, E)
    return o @ params["wo_t"] + params["bo"]


if __name__ == "__main__":
    B, T, E, H = 2, 8, 32, 4   # embed_dim=32, num_heads=4 -> head_dim=8

    key = jax.random.PRNGKey(0)
    keys = jax.random.split(key, 9)
    params = {
        "wq_t": jax.random.normal(keys[0], (E, E), jnp.float32) * 0.05,
        "bq":   jax.random.normal(keys[1], (E,),   jnp.float32) * 0.05,
        "wk_t": jax.random.normal(keys[2], (E, E), jnp.float32) * 0.05,
        "bk":   jax.random.normal(keys[3], (E,),   jnp.float32) * 0.05,
        "wv_t": jax.random.normal(keys[4], (E, E), jnp.float32) * 0.05,
        "bv":   jax.random.normal(keys[5], (E,),   jnp.float32) * 0.05,
        "wo_t": jax.random.normal(keys[6], (E, E), jnp.float32) * 0.05,
        "bo":   jax.random.normal(keys[7], (E,),   jnp.float32) * 0.05,
    }
    hidden_states = jax.random.normal(keys[8], (B, T, E), jnp.float32)

    out = sign_bart_attention(hidden_states, params, num_heads=H)
    out = jax.block_until_ready(out)

    ref = reference(hidden_states, params, num_heads=H)
    assert out.shape == (B, T, E)
    # Softmax normalization is an exact divide now; tolerance reflects the bf16
    # MXU operand casts (f32 accumulation) vs. the pure-f32 reference.
    assert jnp.allclose(out, ref, atol=1e-2, rtol=1e-2), "mismatch vs reference"

    print("KERNEL_OK")
</pallas_src>

<mosaic_0001>
module attributes {stable_mosaic.version = 11 : i64} {
  func.func @_qkv_proj_kernel(%arg0: i32, %arg1: i32, %arg2: i32, %arg3: memref<16x32xbf16, #tpu.memory_space<vmem>>, %arg4: memref<32x32xbf16, #tpu.memory_space<vmem>>, %arg5: memref<32x32xbf16, #tpu.memory_space<vmem>>, %arg6: memref<32x32xbf16, #tpu.memory_space<vmem>>, %arg7: memref<1x32xf32, #tpu.memory_space<vmem>>, %arg8: memref<1x32xf32, #tpu.memory_space<vmem>>, %arg9: memref<1x32xf32, #tpu.memory_space<vmem>>, %arg10: memref<16x32xbf16, #tpu.memory_space<vmem>>, %arg11: memref<16x32xbf16, #tpu.memory_space<vmem>>, %arg12: memref<16x32xbf16, #tpu.memory_space<vmem>>, %arg13: memref<16x32xf32, #tpu.memory_space<vmem>>, %arg14: memref<16x32xf32, #tpu.memory_space<vmem>>, %arg15: memref<16x32xf32, #tpu.memory_space<vmem>>) attributes {dimension_semantics = [#tpu.dimension_semantics<parallel>, #tpu.dimension_semantics<parallel>, #tpu.dimension_semantics<arbitrary>], iteration_bounds = array<i64: 1, 1, 1>, scalar_prefetch = 0 : i64, scratch_operands = 3 : i64, tpu.core_type = #tpu.core_type<tc>, window_params = [{transform_indices = @transform_0, window_bounds = array<i64: 16, 32>}, {transform_indices = @transform_1, window_bounds = array<i64: 32, 32>}, {transform_indices = @transform_2, window_bounds = array<i64: 32, 32>}, {transform_indices = @transform_3, window_bounds = array<i64: 32, 32>}, {transform_indices = @transform_4, window_bounds = array<i64: 1, 32>}, {transform_indices = @transform_5, window_bounds = array<i64: 1, 32>}, {transform_indices = @transform_6, window_bounds = array<i64: 1, 32>}, {transform_indices = @transform_7, window_bounds = array<i64: 16, 32>}, {transform_indices = @transform_8, window_bounds = array<i64: 16, 32>}, {transform_indices = @transform_9, window_bounds = array<i64: 16, 32>}]} {
    %c0_i32 = arith.constant 0 : i32
    %0 = arith.cmpi eq, %arg2, %c0_i32 : i32
    %1 = arith.extui %0 : i1 to i32
    %c0_i32_0 = arith.constant 0 : i32
    %2 = arith.cmpi ne, %1, %c0_i32_0 : i32
    scf.if %2 {
      %c0_24 = arith.constant 0 : index
      %c0_25 = arith.constant 0 : index
      %22 = vector.load %arg7[%c0_24, %c0_25] : memref<1x32xf32, #tpu.memory_space<vmem>>, vector<1x32xf32>
      %23 = vector.shape_cast %22 : vector<1x32xf32> to vector<1x32xf32>
      %24 = vector.broadcast %23 : vector<1x32xf32> to vector<16x32xf32>
      %c0_26 = arith.constant 0 : index
      %c0_27 = arith.constant 0 : index
      %25 = vector.load %arg13[%c0_26, %c0_27] : memref<16x32xf32, #tpu.memory_space<vmem>>, vector<16x32xf32>
      tpu.vector_store %arg13[%c0_26, %c0_27], %24 {strides = array<i32>} : memref<16x32xf32, #tpu.memory_space<vmem>>, vector<16x32xf32>,
      %c0_28 = arith.constant 0 : index
      %c0_29 = arith.constant 0 : index
      %26 = vector.load %arg8[%c0_28, %c0_29] : memref<1x32xf32, #tpu.memory_space<vmem>>, vector<1x32xf32>
      %27 = vector.shape_cast %26 : vector<1x32xf32> to vector<1x32xf32>
      %28 = vector.broadcast %27 : vector<1x32xf32> to vector<16x32xf32>
      %c0_30 = arith.constant 0 : index
      %c0_31 = arith.constant 0 : index
      %29 = vector.load %arg14[%c0_30, %c0_31] : memref<16x32xf32, #tpu.memory_space<vmem>>, vector<16x32xf32>
      tpu.vector_store %arg14[%c0_30, %c0_31], %28 {strides = array<i32>} : memref<16x32xf32, #tpu.memory_space<vmem>>, vector<16x32xf32>,
      %c0_32 = arith.constant 0 : index
      %c0_33 = arith.constant 0 : index
      %30 = vector.load %arg9[%c0_32, %c0_33] : memref<1x32xf32, #tpu.memory_space<vmem>>, vector<1x32xf32>
      %31 = vector.shape_cast %30 : vector<1x32xf32> to vector<1x32xf32>
      %32 = vector.broadcast %31 : vector<1x32xf32> to vector<16x32xf32>
      %c0_34 = arith.constant 0 : index
      %c0_35 = arith.constant 0 : index
      %33 = vector.load %arg15[%c0_34, %c0_35] : memref<16x32xf32, #tpu.memory_space<vmem>>, vector<16x32xf32>
      tpu.vector_store %arg15[%c0_34, %c0_35], %32 {strides = array<i32>} : memref<16x32xf32, #tpu.memory_space<vmem>>, vector<16x32xf32>,
    } else {
    }
    %c0 = arith.constant 0 : index
    %c0_1 = arith.constant 0 : index
    %3 = vector.load %arg3[%c0, %c0_1] : memref<16x32xbf16, #tpu.memory_space<vmem>>, vector<16x32xbf16>
    %c0_2 = arith.constant 0 : index
    %c0_3 = arith.constant 0 : index
    %4 = vector.load %arg13[%c0_2, %c0_3] : memref<16x32xf32, #tpu.memory_space<vmem>>, vector<16x32xf32>
    %c0_4 = arith.constant 0 : index
    %c0_5 = arith.constant 0 : index
    %5 = vector.load %arg4[%c0_4, %c0_5] : memref<32x32xbf16, #tpu.memory_space<vmem>>, vector<32x32xbf16>
    %cst = arith.constant dense<0.000000e+00> : vector<16x32xf32>
    %6 = tpu.matmul %3, %5, %cst {dimension_numbers = #tpu.dot_dimension_numbers<[1], [0], [0], [1], [0, 0, 1, 1], [], []>} : vector<16x32xbf16>, vector<32x32xbf16>, vector<16x32xf32> -> vector<16x32xf32>
    %7 = arith.addf %4, %6 : vector<16x32xf32>
    %c0_6 = arith.constant 0 : index
    %c0_7 = arith.constant 0 : index
    %8 = vector.load %arg13[%c0_6, %c0_7] : memref<16x32xf32, #tpu.memory_space<vmem>>, vector<16x32xf32>
    tpu.vector_store %arg13[%c0_6, %c0_7], %7 {strides = array<i32>} : memref<16x32xf32, #tpu.memory_space<vmem>>, vector<16x32xf32>,
    %c0_8 = arith.constant 0 : index
    %c0_9 = arith.constant 0 : index
    %9 = vector.load %arg14[%c0_8, %c0_9] : memref<16x32xf32, #tpu.memory_space<vmem>>, vector<16x32xf32>
    %c0_10 = arith.constant 0 : index
    %c0_11 = arith.constant 0 : index
    %10 = vector.load %arg5[%c0_10, %c0_11] : memref<32x32xbf16, #tpu.memory_space<vmem>>, vector<32x32xbf16>
    %cst_12 = arith.constant dense<0.000000e+00> : vector<16x32xf32>
    %11 = tpu.matmul %3, %10, %cst_12 {dimension_numbers = #tpu.dot_dimension_numbers<[1], [0], [0], [1], [0, 0, 1, 1], [], []>} : vector<16x32xbf16>, vector<32x32xbf16>, vector<16x32xf32> -> vector<16x32xf32>
    %12 = arith.addf %9, %11 : vector<16x32xf32>
    %c0_13 = arith.constant 0 : index
    %c0_14 = arith.constant 0 : index
    %13 = vector.load %arg14[%c0_13, %c0_14] : memref<16x32xf32, #tpu.memory_space<vmem>>, vector<16x32xf32>
    tpu.vector_store %arg14[%c0_13, %c0_14], %12 {strides = array<i32>} : memref<16x32xf32, #tpu.memory_space<vmem>>, vector<16x32xf32>,
    %c0_15 = arith.constant 0 : index
    %c0_16 = arith.constant 0 : index
    %14 = vector.load %arg15[%c0_15, %c0_16] : memref<16x32xf32, #tpu.memory_space<vmem>>, vector<16x32xf32>
    %c0_17 = arith.constant 0 : index
    %c0_18 = arith.constant 0 : index
    %15 = vector.load %arg6[%c0_17, %c0_18] : memref<32x32xbf16, #tpu.memory_space<vmem>>, vector<32x32xbf16>
    %cst_19 = arith.constant dense<0.000000e+00> : vector<16x32xf32>
    %16 = tpu.matmul %3, %15, %cst_19 {dimension_numbers = #tpu.dot_dimension_numbers<[1], [0], [0], [1], [0, 0, 1, 1], [], []>} : vector<16x32xbf16>, vector<32x32xbf16>, vector<16x32xf32> -> vector<16x32xf32>
    %17 = arith.addf %14, %16 : vector<16x32xf32>
    %c0_20 = arith.constant 0 : index
    %c0_21 = arith.constant 0 : index
    %18 = vector.load %arg15[%c0_20, %c0_21] : memref<16x32xf32, #tpu.memory_space<vmem>>, vector<16x32xf32>
    tpu.vector_store %arg15[%c0_20, %c0_21], %17 {strides = array<i32>} : memref<16x32xf32, #tpu.memory_space<vmem>>, vector<16x32xf32>,
    %c0_i32_22 = arith.constant 0 : i32
    %19 = arith.cmpi eq, %arg2, %c0_i32_22 : i32
    %20 = arith.extui %19 : i1 to i32
    %c0_i32_23 = arith.constant 0 : i32
    %21 = arith.cmpi ne, %20, %c0_i32_23 : i32
    scf.if %21 {
      %c0_24 = arith.constant 0 : index
      %c0_25 = arith.constant 0 : index
      %22 = vector.load %arg13[%c0_24, %c0_25] : memref<16x32xf32, #tpu.memory_space<vmem>>, vector<16x32xf32>
      %23 = arith.truncf %22 : vector<16x32xf32> to vector<16x32xbf16>
      %c0_26 = arith.constant 0 : index
      %c0_27 = arith.constant 0 : index
      %24 = vector.load %arg10[%c0_26, %c0_27] : memref<16x32xbf16, #tpu.memory_space<vmem>>, vector<16x32xbf16>
      tpu.vector_store %arg10[%c0_26, %c0_27], %23 {strides = array<i32>} : memref<16x32xbf16, #tpu.memory_space<vmem>>, vector<16x32xbf16>,
      %c0_28 = arith.constant 0 : index
      %c0_29 = arith.constant 0 : index
      %25 = vector.load %arg14[%c0_28, %c0_29] : memref<16x32xf32, #tpu.memory_space<vmem>>, vector<16x32xf32>
      %26 = arith.truncf %25 : vector<16x32xf32> to vector<16x32xbf16>
      %c0_30 = arith.constant 0 : index
      %c0_31 = arith.constant 0 : index
      %27 = vector.load %arg11[%c0_30, %c0_31] : memref<16x32xbf16, #tpu.memory_space<vmem>>, vector<16x32xbf16>
      tpu.vector_store %arg11[%c0_30, %c0_31], %26 {strides = array<i32>} : memref<16x32xbf16, #tpu.memory_space<vmem>>, vector<16x32xbf16>,
      %c0_32 = arith.constant 0 : index
      %c0_33 = arith.constant 0 : index
      %28 = vector.load %arg15[%c0_32, %c0_33] : memref<16x32xf32, #tpu.memory_space<vmem>>, vector<16x32xf32>
      %29 = arith.truncf %28 : vector<16x32xf32> to vector<16x32xbf16>
      %c0_34 = arith.constant 0 : index
      %c0_35 = arith.constant 0 : index
      %30 = vector.load %arg12[%c0_34, %c0_35] : memref<16x32xbf16, #tpu.memory_space<vmem>>, vector<16x32xbf16>
      tpu.vector_store %arg12[%c0_34, %c0_35], %29 {strides = array<i32>} : memref<16x32xbf16, #tpu.memory_space<vmem>>, vector<16x32xbf16>,
    } else {
    }
    return
  }
  func.func @transform_0(%arg0: i32, %arg1: i32, %arg2: i32) -> (i32, i32) {
    %c0_i32 = arith.constant 0 : i32
    return %arg0, %arg2 : i32, i32
  }
  func.func @transform_1(%arg0: i32, %arg1: i32, %arg2: i32) -> (i32, i32) {
    %c0_i32 = arith.constant 0 : i32
    return %arg2, %arg1 : i32, i32
  }
  func.func @transform_2(%arg0: i32, %arg1: i32, %arg2: i32) -> (i32, i32) {
    %c0_i32 = arith.constant 0 : i32
    return %arg2, %arg1 : i32, i32
  }
  func.func @transform_3(%arg0: i32, %arg1: i32, %arg2: i32) -> (i32, i32) {
    %c0_i32 = arith.constant 0 : i32
    return %arg2, %arg1 : i32, i32
  }
  func.func @transform_4(%arg0: i32, %arg1: i32, %arg2: i32) -> (i32, i32) {
    %c0_i32 = arith.constant 0 : i32
    %c0_i32_0 = arith.constant 0 : i32
    return %c0_i32, %arg1 : i32, i32
  }
  func.func @transform_5(%arg0: i32, %arg1: i32, %arg2: i32) -> (i32, i32) {
    %c0_i32 = arith.constant 0 : i32
    %c0_i32_0 = arith.constant 0 : i32
    return %c0_i32, %arg1 : i32, i32
  }
  func.func @transform_6(%arg0: i32, %arg1: i32, %arg2: i32) -> (i32, i32) {
    %c0_i32 = arith.constant 0 : i32
    %c0_i32_0 = arith.constant 0 : i32
    return %c0_i32, %arg1 : i32, i32
  }
  func.func @transform_7(%arg0: i32, %arg1: i32, %arg2: i32) -> (i32, i32) {
    %c0_i32 = arith.constant 0 : i32
    return %arg0, %arg1 : i32, i32
  }
  func.func @transform_8(%arg0: i32, %arg1: i32, %arg2: i32) -> (i32, i32) {
    %c0_i32 = arith.constant 0 : i32
    return %arg0, %arg1 : i32, i32
  }
  func.func @transform_9(%arg0: i32, %arg1: i32, %arg2: i32) -> (i32, i32) {
    %c0_i32 = arith.constant 0 : i32
    return %arg0, %arg1 : i32, i32
  }
}

</mosaic_0001>

<bundles_post_ra>
// kernel: tpu_custom_call.1
= control target key start
LH: loop header
LB: loop body
LE: loop exit
PB: predicated region body
PF: predicated region fallthrough
CT: control target
= control target key end

     0   :  { %15 = vsyncpa [#allocation6], 0  ;;  %s869_s0 = inlined_call_operand.hbm [shape: bf16[16,32], index: 0, kind: input, shape index: {}]   ;;  %s870_s1 = inlined_call_operand.hbm [shape: bf16[32,32], index: 1, kind: input, shape index: {}]   ;;  %s871_s2 = inlined_call_operand.hbm [shape: bf16[32,32], index: 2, kind: input, shape index: {}]   ;;  %s872_s3 = inlined_call_operand.hbm [shape: bf16[32,32], index: 3, kind: input, shape index: {}]   ;;  %s873_s4 = inlined_call_operand.vmem [shape: f32[1,32], index: 4, kind: input, shape index: {}]   ;;  %s874_s5 = inlined_call_operand.vmem [shape: f32[1,32], index: 5, kind: input, shape index: {}]   ;;  %s875_s6 = inlined_call_operand.vmem [shape: f32[1,32], index: 6, kind: input, shape index: {}]   ;;  %s876_s7 = inlined_call_operand.hbm [shape: bf16[16,32], index: 7, kind: output, shape index: {0}]   ;;  %s877_s8 = inlined_call_operand.hbm [shape: bf16[16,32], index: 8, kind: output, shape index: {1}]   ;;  %s878_s9 = inlined_call_operand.hbm [shape: bf16[16,32], index: 9, kind: output, shape index: {2}]  }
   0x1   :  { %16 = vsyncpa [#allocation9], 0 }
   0x2   :  { %17 = vsyncpa [#allocation12], 0 }
   0x3   :  { %18 = vsyncpa [#allocation7], 0 }
   0x4   :  { %19 = vsyncpa [#allocation15], 0  ;;  %s649_s30 = smov [#allocation8]   ;;  %s650_s11 = smov [#allocation5]  }
   0x5   :  { %s37_s10 = sshll.u32 %s649_s30, 4  ;;  %s25_s12 = sshll.u32 %s650_s11, 4  ;;  %s38_s10 = int_to_ptr.vmem [resolvable:$true] %s37_s10  ;;  %s710_s12 = int_to_ptr.vmem [resolvable:$true] %s25_s12 }
   0x6   :  { %s485_s15 = scalar_lea.hbm %s870_s1, 256 }
   0x7   :  { %p486_p0 = scmp.ne.s32.totalorder %s870_s1, %s485_s15  ;;  %p489_p1 = scmp.lt.u32.totalorder %s485_s15, %s870_s1 }
   0x9   :  { %p491_p2 = pnand %p489_p1, %p486_p0 }
   0xb   :  { %494 = shalt.err (!%p491_p2)
}
   0xc   :  { %s495_s20 = scalar_lea.vmem %s38_s10, 256  ;;  %p500_p4 = scmp.lt.s32.totalorder %s38_s10, %s38_s10 }
   0xd   :  { %p496_p3 = scmp.ne.s32.totalorder %s38_s10, %s495_s20  ;;  %p501_p5 = scmp.lt.s32.totalorder %s495_s20, %s495_s20 }
   0xf   :  { %p502_p6 = por %p501_p5, %p500_p4 }
  0x11   :  { %p503_p7 = pnand %p502_p6, %p496_p3 }
  0x13   :  { %506 = shalt.err (!%p503_p7)
}
  0x14   :  { %s651_s21 = smov 64   ;;  %s652_s22 = smov 4  }
  0x15   :  { %43 = dma.hbm_to_vmem [thread:$0]  %s870_s1, 256, %s38_s10, [#allocation9], %s651_s21, %s651_s21, %s652_s22  }
  0x16   :  { %s507_s27 = scalar_lea.hbm %s869_s0, 128 }
  0x17   :  { %p508_p8 = scmp.ne.s32.totalorder %s869_s0, %s507_s27  ;;  %p511_p9 = scmp.lt.u32.totalorder %s507_s27, %s869_s0 }
  0x19   :  { %p513_p10 = pnand %p511_p9, %p508_p8 }
  0x1b   :  { %516 = shalt.err (!%p513_p10)
}
  0x1c   :  { %s517_s13 = scalar_lea.vmem %s710_s12, 128  ;;  %p522_p12 = scmp.lt.s32.totalorder %s710_s12, %s710_s12 }
  0x1d   :  { %p518_p11 = scmp.ne.s32.totalorder %s710_s12, %s517_s13  ;;  %p523_p13 = scmp.lt.s32.totalorder %s517_s13, %s517_s13 }
  0x1f   :  { %p524_p0 = por %p523_p13, %p522_p12 }
  0x21   :  { %p525_p1 = pnand %p524_p0, %p518_p11 }
  0x23   :  { %528 = shalt.err (!%p525_p1)
}
  0x24   :  { %31 = dma.hbm_to_vmem [thread:$0]  %s869_s0, 128, %s710_s12, [#allocation6], %s651_s21, %s651_s21, %s652_s22  }
  0x25   :  { %s653_s14 = smov [#allocation10]   ;;  %s654_s16 = smov [#allocation11]  }
  0x26   :  { %s49_s15 = sshll.u32 %s653_s14, 4  ;;  %s61_s17 = sshll.u32 %s654_s16, 4  ;;  %s50_s15 = int_to_ptr.vmem [resolvable:$true] %s49_s15  ;;  %s747_s17 = int_to_ptr.vmem [resolvable:$true] %s61_s17 }
  0x27   :  { %s529_s20 = scalar_lea.hbm %s871_s2, 256 }
  0x28   :  { %p530_p2 = scmp.ne.s32.totalorder %s871_s2, %s529_s20  ;;  %p533_p3 = scmp.lt.u32.totalorder %s529_s20, %s871_s2 }
  0x2a   :  { %p535_p4 = pnand %p533_p3, %p530_p2 }
  0x2c   :  { %538 = shalt.err (!%p535_p4)
}
  0x2d   :  { %s539_s0 = scalar_lea.vmem %s50_s15, 256  ;;  %p544_p6 = scmp.lt.s32.totalorder %s50_s15, %s50_s15 }
  0x2e   :  { %p540_p5 = scmp.ne.s32.totalorder %s50_s15, %s539_s0  ;;  %p545_p7 = scmp.lt.s32.totalorder %s539_s0, %s539_s0 }
  0x30   :  { %p546_p8 = por %p545_p7, %p544_p6 }
  0x32   :  { %p547_p9 = pnand %p546_p8, %p540_p5 }
  0x34   :  { %550 = shalt.err (!%p547_p9)
}
  0x35   :  { %55 = dma.hbm_to_vmem [thread:$0]  %s871_s2, 256, %s50_s15, [#allocation9], %s651_s21, %s651_s21, %s652_s22  }
  0x36   :  { %s551_s30 = scalar_lea.hbm %s872_s3, 256 }
  0x37   :  { %p552_p10 = scmp.ne.s32.totalorder %s872_s3, %s551_s30  ;;  %p555_p11 = scmp.lt.u32.totalorder %s551_s30, %s872_s3 }
  0x39   :  { %p557_p12 = pnand %p555_p11, %p552_p10 }
  0x3b   :  { %560 = shalt.err (!%p557_p12)
}
  0x3c   :  { %s561_s14 = scalar_lea.vmem %s747_s17, 256  ;;  %p566_p0 = scmp.lt.s32.totalorder %s747_s17, %s747_s17 }
  0x3d   :  { %p562_p13 = scmp.ne.s32.totalorder %s747_s17, %s561_s14  ;;  %p567_p1 = scmp.lt.s32.totalorder %s561_s14, %s561_s14 }
  0x3f   :  { %p568_p2 = por %p567_p1, %p566_p0 }
  0x41   :  { %p569_p3 = pnand %p568_p2, %p562_p13 }
  0x43   :  { %572 = shalt.err (!%p569_p3)
}
  0x44   :  { %67 = dma.hbm_to_vmem [thread:$0]  %s872_s3, 256, %s747_s17, [#allocation12], %s651_s21, %s651_s21, %s652_s22  }
  0x45   :  { %639 = dma.done.wait [#allocation6], 128  }
  0x46   :  { %640 = vsyncadd [#allocation6], 4294967168 }
  0x47   :  { %641 = dma.done.wait [#allocation9], 512  }
  0x48   :  { %642 = vsyncadd [#allocation9], 4294966784 }
  0x49   :  { %643 = dma.done.wait [#allocation12], 256  }
  0x4a   :  { %644 = vsyncadd [#allocation12], 4294967040  ;;  %v655_v0 = vmov 0.0   ;;  %vm656_vm0 = vmmov 0   ;;  %v478_v1 = vld [vmem:[#allocation8] sm:$0xff]   ;;  %v479_v2 = vld [vmem:[#allocation8 + $0x8] sm:$0xff]  }
  0x4b   :  { %443 = vmatprep.subr.bf16.mxu0 %v655_v0  ;;  %451 = vmatprep.subr.bf16.mxu1 %v655_v0  ;;  %v480_v3 = vld [vmem:[#allocation10] sm:$0xff]   ;;  %v481_v4 = vld [vmem:[#allocation5] sm:$0xff]   ;;  %vm98_vm1 = vcmask 261120   ;;  %v482_v6 = vld [vmem:[#allocation11] sm:$0xff]   ;;  %vm332_vm2 = vcmask 257024   ;;  %s658_s20 = smov [#allocation14]  }
  0x4c   :  { %447 = vmatprep.mubr.msk.bf16.mxu0 %vm656_vm0, %v655_v0  ;;  %455 = vmatprep.mubr.msk.bf16.mxu1 %vm656_vm0, %v655_v0  ;;  %v483_v5 = vld [vmem:[#allocation10 + $0x8] sm:$0xff]   ;;  %v409_v7 = vld [vmem:[%s873_s4] ss:$0 sm:$0xff]  ;;  %s376_s23 = sshll.u32 %s658_s20, 4  ;;  %s813_s23 = int_to_ptr.vmem [resolvable:$true] %s376_s23 }
  0x4d   :  { %444 = vmatpush3.bf16.msra.mxu0 %v478_v1  ;;  %452 = vmatpush3.bf16.msra.mxu1 %v480_v3  ;;  %99 = vst.msk [vmem:[#allocation2] sm:$0xff] %vm98_vm1, %v409_v7  ;;  %100 = vst.msk [vmem:[#allocation2 + $0x8] sm:$0xff] %vm98_vm1, %v409_v7  ;;  %v484_v8 = vld [vmem:[#allocation11 + $0x8] sm:$0xff]  }
  0x4e   :  { %445 = vmatprep.subr.bf16.mxu0 %v655_v0  ;;  %453 = vmatprep.subr.bf16.mxu1 %v655_v0  ;;  %v410_v9 = vld [vmem:[%s874_s5] ss:$0 sm:$0xff]  ;;  %s657_s5 = smov [#allocation13]  }
  0x4f   :  { %108 = vst.msk [vmem:[#allocation3] sm:$0xff] %vm98_vm1, %v410_v9  ;;  %109 = vst.msk [vmem:[#allocation3 + $0x8] sm:$0xff] %vm98_vm1, %v410_v9  ;;  %v411_v10 = vld [vmem:[%s875_s6] ss:$0 sm:$0xff]  ;;  %s364_s6 = sshll.u32 %s657_s5, 4  ;;  %s365_s6 = int_to_ptr.vmem [resolvable:$true] %s364_s6 }
  0x50   :  { %117 = vst.msk [vmem:[#allocation4] sm:$0xff] %vm98_vm1, %v411_v10  ;;  %118 = vst.msk [vmem:[#allocation4 + $0x8] sm:$0xff] %vm98_vm1, %v411_v10  ;;  %s573_s24 = scalar_lea.vmem %s365_s6, 128  ;;  %p578_p5 = scmp.lt.s32.totalorder %s365_s6, %s365_s6 }
  0x51   :  { %446 = vmatpush3.bf16.msra.mxu0 %v479_v2  ;;  %454 = vmatpush3.bf16.msra.mxu1 %v483_v5  ;;  %p574_p4 = scmp.ne.s32.totalorder %s365_s6, %s573_s24  ;;  %p579_p6 = scmp.lt.s32.totalorder %s573_s24, %s573_s24 }
  0x52   :  { %459 = vmatprep.subr.bf16.mxu0 %v655_v0 }
  0x53   :  { %p580_p7 = por %p579_p6, %p578_p5 }
  0x54   :  { %448 = vmatmul.mubr.msk.bf16.vlgmr.msra.gmra.mrb[0].mxu0 %vm98_vm1, %v481_v4  ;;  %456 = vmatmul.mubr.msk.bf16.vlgmr.msra.gmra.mrb[0].mxu1 %vm98_vm1, %v481_v4  ;;  %v121_v11 = vld [vmem:[#allocation2] sm:$0xff]  ;;  %v122_v13 = vld [vmem:[#allocation2 + $0x8] sm:$0xff] }
  0x55   :  { %460 = vmatpush3.bf16.msra.mxu0 %v482_v6  ;;  %463 = vmatprep.mubr.msk.bf16.mxu0 %vm656_vm0, %v655_v0  ;;  %p581_p8 = pnand %p580_p7, %p574_p4 }
  0x56   :  { %461 = vmatprep.subr.bf16.mxu0 %v655_v0  ;;  %v193_v14 = vld [vmem:[#allocation3] sm:$0xff]  ;;  %v194_v19 = vld [vmem:[#allocation3 + $0x8] sm:$0xff] }
  0x57   :  { %v256_v27 = vld [vmem:[#allocation4] sm:$0xff]  ;;  %v257_v29 = vld [vmem:[#allocation4 + $0x8] sm:$0xff] }
  0x59   :  { %462 = vmatpush3.bf16.msra.mxu0 %v484_v8 }
  0x5c   :  { %464 = vmatmul.mubr.msk.bf16.vlgmr.msra.gmra.mrb[4].mxu0 %vm98_vm1, %v481_v4 }
 0x127   :  { %v182_v12 = vpop.f32.mrb[0].mxu0  ;;  %v245_v18 = vpop.f32.mrb[0].mxu1 }
 0x128   :  { %v189_v15 = vadd.f32 %v182_v12, %v121_v11  ;;  %v449_v16 = vpop.f32.mrb[1].mxu0  ;;  %v252_v22 = vadd.f32 %v245_v18, %v193_v14  ;;  %v457_v23 = vpop.f32.mrb[1].mxu1 }
 0x129   :  { %v185_v17 = vpop.f32.mrb[2].mxu0  ;;  %v248_v24 = vpop.f32.mrb[2].mxu1 }
 0x12a   :  { %191 = vst.msk [vmem:[#allocation2] sm:$0xff] %vm98_vm1, %v189_v15  ;;  %v190_v20 = vadd.f32 %v185_v17, %v122_v13  ;;  %v450_v21 = vpop.f32.mrb[3].mxu0  ;;  %254 = vst.msk [vmem:[#allocation3] sm:$0xff] %vm98_vm1, %v252_v22  ;;  %v253_v25 = vadd.f32 %v248_v24, %v194_v19  ;;  %v458_v26 = vpop.f32.mrb[3].mxu1 }
 0x12c   :  { %192 = vst.msk [vmem:[#allocation2 + $0x8] sm:$0xff] %vm98_vm1, %v190_v20  ;;  %255 = vst.msk [vmem:[#allocation3 + $0x8] sm:$0xff] %vm98_vm1, %v253_v25 }
 0x12f   :  { %v308_v28 = vpop.f32.mrb[4].mxu0 }
 0x130   :  { %v315_v30 = vadd.f32 %v308_v28, %v256_v27  ;;  %v465_v31 = vpop.f32.mrb[5].mxu0 }
 0x131   :  { %v311_v32 = vpop.f32.mrb[6].mxu0  ;;  %v322_v33 = vld [vmem:[#allocation2] sm:$0xff]  ;;  %v335_v37 = vld [vmem:[#allocation3] sm:$0xff] }
 0x132   :  { %317 = vst.msk [vmem:[#allocation4] sm:$0xff] %vm98_vm1, %v315_v30  ;;  %v316_v34 = vadd.f32 %v311_v32, %v257_v29  ;;  %v466_v35 = vpop.f32.mrb[7].mxu0  ;;  %v428_v36 = vpack.c.bf16 %v322_v33, %v322_v33  ;;  %v430_v39 = vpack.c.bf16 %v335_v37, %v335_v37 }
 0x133   :  { %v323_v38 = vld [vmem:[#allocation2 + $0x8] sm:$0xff]  ;;  %v336_v41 = vld [vmem:[#allocation3 + $0x8] sm:$0xff] }
 0x134   :  { %318 = vst.msk [vmem:[#allocation4 + $0x8] sm:$0xff] %vm98_vm1, %v316_v34  ;;  %v429_v40 = vpack.c.bf16 %v323_v38, %v323_v38  ;;  %v431_v42 = vpack.c.bf16 %v336_v41, %v336_v41 }
 0x135   :  { %333 = vst.msk [vmem:[#allocation13] sm:$0xf] %vm332_vm2, %v428_v36  ;;  %345 = vst.msk [vmem:[#allocation14] sm:$0xf] %vm332_vm2, %v430_v39 }
 0x136   :  { %334 = vst.msk [vmem:[#allocation13 + $0x4] sm:$0xf] %vm332_vm2, %v429_v40 }
 0x137   :  { %584 = shalt.err (!%p581_p8)
}
 0x138   :  { %s585_s0 = scalar_lea.hbm %s876_s7, 128 }
 0x139   :  { %p586_p9 = scmp.ne.s32.totalorder %s876_s7, %s585_s0  ;;  %p589_p10 = scmp.lt.u32.totalorder %s585_s0, %s876_s7 }
 0x13b   :  { %p591_p11 = pnand %p589_p10, %p586_p9 }
 0x13d   :  { %594 = shalt.err (!%p591_p11)
}
 0x13e   :  { %370 = dma.vmem_to_hbm [thread:$0]  %s365_s6, 128, %s876_s7, [#allocation7], %s651_s21, %s651_s21, %s652_s22   ;;  %346 = vst.msk [vmem:[#allocation14 + $0x4] sm:$0xf] %vm332_vm2, %v431_v42 }
 0x13f   :  { %s659_s13 = smov [#allocation16]   ;;  %s595_s10 = scalar_lea.vmem %s813_s23, 128 }
 0x140   :  { %s388_s1 = sshll.u32 %s659_s13, 4  ;;  %p596_p12 = scmp.ne.s32.totalorder %s813_s23, %s595_s10  ;;  %s389_s1 = int_to_ptr.vmem [resolvable:$true] %s388_s1 }
 0x141   :  { %p600_p13 = scmp.lt.s32.totalorder %s813_s23, %s813_s23  ;;  %p601_p0 = scmp.lt.s32.totalorder %s595_s10, %s595_s10 }
 0x143   :  { %p602_p1 = por %p601_p0, %p600_p13 }
 0x145   :  { %p603_p2 = pnand %p602_p1, %p596_p12 }
 0x147   :  { %606 = shalt.err (!%p603_p2)
}
 0x148   :  { %s607_s15 = scalar_lea.hbm %s877_s8, 128 }
 0x149   :  { %p608_p3 = scmp.ne.s32.totalorder %s877_s8, %s607_s15  ;;  %p611_p4 = scmp.lt.u32.totalorder %s607_s15, %s877_s8 }
 0x14b   :  { %p613_p5 = pnand %p611_p4, %p608_p3 }
 0x14d   :  { %616 = shalt.err (!%p613_p5)
}
 0x14e   :  { %382 = dma.vmem_to_hbm [thread:$0]  %s813_s23, 128, %s877_s8, [#allocation15], %s651_s21, %s651_s21, %s652_s22   ;;  %v347_v43 = vld [vmem:[#allocation4] sm:$0xff]  ;;  %v348_v45 = vld [vmem:[#allocation4 + $0x8] sm:$0xff] }
 0x14f   :  { %v432_v44 = vpack.c.bf16 %v347_v43, %v347_v43  ;;  %v433_v46 = vpack.c.bf16 %v348_v45, %v348_v45  ;;  %s617_s19 = scalar_lea.vmem %s389_s1, 128  ;;  %p622_p7 = scmp.lt.s32.totalorder %s389_s1, %s389_s1 }
 0x150   :  { %p618_p6 = scmp.ne.s32.totalorder %s389_s1, %s617_s19  ;;  %p623_p8 = scmp.lt.s32.totalorder %s617_s19, %s617_s19 }
 0x151   :  { %357 = vst.msk [vmem:[#allocation16] sm:$0xf] %vm332_vm2, %v432_v44  ;;  %358 = vst.msk [vmem:[#allocation16 + $0x4] sm:$0xf] %vm332_vm2, %v433_v46 }
 0x152   :  { %p624_p9 = por %p623_p8, %p622_p7 }
 0x154   :  { %p625_p10 = pnand %p624_p9, %p618_p6 }
 0x156   :  { %628 = shalt.err (!%p625_p10)
}
 0x157   :  { %s629_s8 = scalar_lea.hbm %s878_s9, 128 }
 0x158   :  { %p630_p11 = scmp.ne.s32.totalorder %s878_s9, %s629_s8  ;;  %p633_p12 = scmp.lt.u32.totalorder %s629_s8, %s878_s9 }
 0x15a   :  { %p635_p13 = pnand %p633_p12, %p630_p11 }
 0x15c   :  { %638 = shalt.err (!%p635_p13)
}
 0x15d   :  { %394 = dma.vmem_to_hbm [thread:$0]  %s389_s1, 128, %s878_s9, [#allocation15], %s651_s21, %s651_s21, %s652_s22  }
 0x15e   :  { %645 = dma.done.wait [#allocation7], 128  }
 0x15f   :  { %646 = vsyncadd [#allocation7], 4294967168 }
 0x160   :  { %647 = dma.done.wait [#allocation15], 256  }
 0x161   :  { %648 = vsyncadd [#allocation15], 4294967040 }
 0x162   :  { %404 = vsyncpa [#allocation6], 1 }
 0x163   :  { %405 = vsyncpa [#allocation9], 1 }
 0x164   :  { %406 = vsyncpa [#allocation12], 1 }
 0x165   :  { %407 = vsyncpa [#allocation7], 1 }
 0x166   :  { %408 = vsyncpa [#allocation15], 1 }

</bundles_post_ra>
